<compile_context>
chip_gen: v5e
topology: v5e:2x2
jax: 0.10.0
libtpu: 0.0.40
codegen_flags: <defaults>
</compile_context>

<pallas_src>
import jax
import jax.numpy as jnp
from jax.experimental import pallas as pl
from jax.experimental.pallas import tpu as pltpu

# (in_features, out_features) for enc1..enc8. PyTorch nn.Linear stores W as (out, in);
# here weights are kept transposed as (in, out) so the kernel computes x @ W + b.
LAYER_DIMS = [(784, 256), (256, 128), (128, 64), (64, 32),
              (32, 16), (16, 8), (8, 4), (4, 2)]

D_IN = 784      # x last dim; used un-padded (block last dim == full array dim)
OUT_PAD = 128   # lane-dense output store; real logits live in [:, :2]
TM_MAX = 512    # batch tile (85%+ of HBM roofline per measured tile-size curve)


def _round_up(x, m):
    return ((x + m - 1) // m) * m


def _encoder_kernel(x_ref, *refs):
    """refs = (w1, b1, ..., w8, b8, o_ref). x f32, weights bf16, biases f32, output f32."""
    o_ref = refs[-1]
    wb_refs = refs[:-1]
    n_layers = len(wb_refs) // 2

    # In-kernel bf16 cast of the activation tile (keeps HBM read at raw f32 bytes,
    # no extra wrapper-side convert pass).
    h = x_ref[...].astype(jnp.bfloat16)               # (TM, 784) bf16
    for li in range(n_layers):
        w = wb_refs[2 * li][...]                      # (in, out) bf16
        b = wb_refs[2 * li + 1][...]                  # (1, out)  f32
        acc = jnp.dot(h, w, preferred_element_type=jnp.float32) + b
        acc = jnp.maximum(acc, 0.0)                   # bias-add + ReLU in f32
        if li < n_layers - 1:
            h = acc.astype(jnp.bfloat16)              # bf16 feed to next MXU pass
        else:
            o_ref[...] = acc.astype(o_ref.dtype)      # (TM, 128) lane-dense store


def init_params(key):
    """Deterministic synthetic parameters (shapes match the PyTorch module)."""
    params = []
    for (fan_in, fan_out) in LAYER_DIMS:
        key, kw, kb = jax.random.split(key, 3)
        bound = 1.0 / jnp.sqrt(fan_in)
        w = jax.random.uniform(kw, (fan_in, fan_out), jnp.float32, -bound, bound)
        b = jax.random.uniform(kb, (1, fan_out), jnp.float32, -bound, bound)
        params.append((w, b))
    return params


@jax.jit
def encoder_forward(x, params_flat):
    """x: [B, 784] float32 -> [B, 2] float32."""
    B, D = x.shape
    assert D == D_IN
    n_layers = len(params_flat) // 2

    # Batch tile: up to TM_MAX rows; tiny batches round up to a sublane multiple only.
    TM = min(TM_MAX, _round_up(B, 8))
    B_pad = _round_up(B, TM)

    # Only batch padding (no dtype cast, no K pad): when B % TM == 0 this is a no-op
    # that XLA elides, so the kernel reads x straight from its original HBM buffer.
    x_p = x if B_pad == B else jnp.pad(x, ((0, B_pad - B), (0, 0)))

    # Parameters: bf16 weights (W8 output-padded to 128 cols), f32 biases.
    ws, bs, padded_dims = [], [], []
    for li in range(n_layers):
        w = params_flat[2 * li]
        b = params_flat[2 * li + 1]
        fi, fo = w.shape
        fo_p = OUT_PAD if li == n_layers - 1 else fo
        ws.append(jnp.pad(w, ((0, 0), (0, fo_p - fo))).astype(jnp.bfloat16))
        bs.append(jnp.pad(b, ((0, 0), (0, fo_p - fo))).astype(jnp.float32))
        padded_dims.append((fi, fo_p))

    grid = (B_pad // TM,)

    # Activations: tiled over batch. Weights/biases: full arrays, constant block index
    # (resident in VMEM; Pallas skips redundant DMAs between steps).
    in_specs = [pl.BlockSpec((TM, D_IN), lambda i: (i, 0))]
    flat_params = []
    for li, (fi_p, fo_p) in enumerate(padded_dims):
        in_specs.append(pl.BlockSpec((fi_p, fo_p), lambda i: (0, 0)))
        in_specs.append(pl.BlockSpec((1, fo_p), lambda i: (0, 0)))
        flat_params.extend([ws[li], bs[li]])

    out_spec = pl.BlockSpec((TM, OUT_PAD), lambda i: (i, 0))

    flops = 2 * B_pad * sum(fi * fo for fi, fo in LAYER_DIMS)
    param_bytes = sum(w.size * 2 for w in ws) + sum(b.size * 4 for b in bs)
    bytes_accessed = B_pad * D_IN * 4 + B_pad * OUT_PAD * 4 + param_bytes
    cost = pl.CostEstimate(flops=flops, transcendentals=0,
                           bytes_accessed=bytes_accessed)

    out = pl.pallas_call(
        _encoder_kernel,
        out_shape=jax.ShapeDtypeStruct((B_pad, OUT_PAD), jnp.float32),
        grid_spec=pltpu.PrefetchScalarGridSpec(
            num_scalar_prefetch=0,
            grid=grid,
            in_specs=in_specs,
            out_specs=out_spec,
        ),
        compiler_params=pltpu.CompilerParams(
            dimension_semantics=("parallel",),
        ),
        cost_estimate=cost,
    )(x_p, *flat_params)

    return out[:B, :2]


def encoder_reference(x, params):
    """Pure-JAX reference that mirrors the kernel's bf16 quantization exactly."""
    h = x.astype(jnp.bfloat16)
    n = len(params)
    for i, (w, b) in enumerate(params):
        w_q = w.astype(jnp.bfloat16).astype(jnp.float32)
        acc = h.astype(jnp.float32) @ w_q + b
        acc = jnp.maximum(acc, 0.0)
        h = acc.astype(jnp.bfloat16) if i < n - 1 else acc
    return h


if __name__ == "__main__":
    key = jax.random.PRNGKey(0)
    key, kx = jax.random.split(key)

    B = 2
    x = jax.random.normal(kx, (B, 784), jnp.float32)

    params = init_params(key)
    params_flat = tuple(p for wb in params for p in wb)

    y = encoder_forward(x, params_flat)
    y = jax.block_until_ready(y)

    y_ref = encoder_reference(x, params)
    assert y.shape == (B, 2), y.shape
    assert jnp.allclose(y, y_ref, atol=2e-3, rtol=2e-3), (y, y_ref)

    print("KERNEL_OK")
</pallas_src>

<mosaic_0001>
module attributes {stable_mosaic.version = 11 : i64} {
  func.func @_encoder_kernel(%arg0: i32, %arg1: memref<8x784xf32, #tpu.memory_space<vmem>>, %arg2: memref<784x256xbf16, #tpu.memory_space<vmem>>, %arg3: memref<1x256xf32, #tpu.memory_space<vmem>>, %arg4: memref<256x128xbf16, #tpu.memory_space<vmem>>, %arg5: memref<1x128xf32, #tpu.memory_space<vmem>>, %arg6: memref<128x64xbf16, #tpu.memory_space<vmem>>, %arg7: memref<1x64xf32, #tpu.memory_space<vmem>>, %arg8: memref<64x32xbf16, #tpu.memory_space<vmem>>, %arg9: memref<1x32xf32, #tpu.memory_space<vmem>>, %arg10: memref<32x16xbf16, #tpu.memory_space<vmem>>, %arg11: memref<1x16xf32, #tpu.memory_space<vmem>>, %arg12: memref<16x8xbf16, #tpu.memory_space<vmem>>, %arg13: memref<1x8xf32, #tpu.memory_space<vmem>>, %arg14: memref<8x4xbf16, #tpu.memory_space<vmem>>, %arg15: memref<1x4xf32, #tpu.memory_space<vmem>>, %arg16: memref<4x128xbf16, #tpu.memory_space<vmem>>, %arg17: memref<1x128xf32, #tpu.memory_space<vmem>>, %arg18: memref<8x128xf32, #tpu.memory_space<vmem>>) attributes {dimension_semantics = [#tpu.dimension_semantics<parallel>], iteration_bounds = array<i64: 1>, scalar_prefetch = 0 : i64, scratch_operands = 0 : i64, tpu.core_type = #tpu.core_type<tc>, window_params = [{transform_indices = @transform_0, window_bounds = array<i64: 8, 784>}, {pipeline_mode = #tpu.pipeline_mode<synchronous>, transform_indices = @transform_1, window_bounds = array<i64: 784, 256>}, {pipeline_mode = #tpu.pipeline_mode<synchronous>, transform_indices = @transform_2, window_bounds = array<i64: 1, 256>}, {pipeline_mode = #tpu.pipeline_mode<synchronous>, transform_indices = @transform_3, window_bounds = array<i64: 256, 128>}, {pipeline_mode = #tpu.pipeline_mode<synchronous>, transform_indices = @transform_4, window_bounds = array<i64: 1, 128>}, {pipeline_mode = #tpu.pipeline_mode<synchronous>, transform_indices = @transform_5, window_bounds = array<i64: 128, 64>}, {pipeline_mode = #tpu.pipeline_mode<synchronous>, transform_indices = @transform_6, window_bounds = array<i64: 1, 64>}, {pipeline_mode = #tpu.pipeline_mode<synchronous>, transform_indices = @transform_7, window_bounds = array<i64: 64, 32>}, {pipeline_mode = #tpu.pipeline_mode<synchronous>, transform_indices = @transform_8, window_bounds = array<i64: 1, 32>}, {pipeline_mode = #tpu.pipeline_mode<synchronous>, transform_indices = @transform_9, window_bounds = array<i64: 32, 16>}, {pipeline_mode = #tpu.pipeline_mode<synchronous>, transform_indices = @transform_10, window_bounds = array<i64: 1, 16>}, {pipeline_mode = #tpu.pipeline_mode<synchronous>, transform_indices = @transform_11, window_bounds = array<i64: 16, 8>}, {pipeline_mode = #tpu.pipeline_mode<synchronous>, transform_indices = @transform_12, window_bounds = array<i64: 1, 8>}, {pipeline_mode = #tpu.pipeline_mode<synchronous>, transform_indices = @transform_13, window_bounds = array<i64: 8, 4>}, {pipeline_mode = #tpu.pipeline_mode<synchronous>, transform_indices = @transform_14, window_bounds = array<i64: 1, 4>}, {pipeline_mode = #tpu.pipeline_mode<synchronous>, transform_indices = @transform_15, window_bounds = array<i64: 4, 128>}, {pipeline_mode = #tpu.pipeline_mode<synchronous>, transform_indices = @transform_16, window_bounds = array<i64: 1, 128>}, {transform_indices = @transform_17, window_bounds = array<i64: 8, 128>}]} {
    %c0 = arith.constant 0 : index
    %c0_0 = arith.constant 0 : index
    %0 = vector.load %arg1[%c0, %c0_0] : memref<8x784xf32, #tpu.memory_space<vmem>>, vector<8x784xf32>
    %1 = arith.truncf %0 : vector<8x784xf32> to vector<8x784xbf16>
    %c0_1 = arith.constant 0 : index
    %c0_2 = arith.constant 0 : index
    %2 = vector.load %arg2[%c0_1, %c0_2] : memref<784x256xbf16, #tpu.memory_space<vmem>>, vector<784x256xbf16>
    %c0_3 = arith.constant 0 : index
    %c0_4 = arith.constant 0 : index
    %3 = vector.load %arg3[%c0_3, %c0_4] : memref<1x256xf32, #tpu.memory_space<vmem>>, vector<1x256xf32>
    %cst = arith.constant dense<0.000000e+00> : vector<8x256xf32>
    %4 = tpu.matmul %1, %2, %cst {dimension_numbers = #tpu.dot_dimension_numbers<[1], [0], [0], [1], [0, 0, 1, 1], [], []>} : vector<8x784xbf16>, vector<784x256xbf16>, vector<8x256xf32> -> vector<8x256xf32>
    %5 = vector.broadcast %3 : vector<1x256xf32> to vector<8x256xf32>
    %6 = arith.addf %4, %5 : vector<8x256xf32>
    %cst_5 = arith.constant 0.000000e+00 : f32
    %7 = vector.broadcast %cst_5 : f32 to vector<8x256xf32>
    %8 = arith.maximumf %6, %7 : vector<8x256xf32>
    %9 = arith.truncf %8 : vector<8x256xf32> to vector<8x256xbf16>
    %c0_6 = arith.constant 0 : index
    %c0_7 = arith.constant 0 : index
    %10 = vector.load %arg4[%c0_6, %c0_7] : memref<256x128xbf16, #tpu.memory_space<vmem>>, vector<256x128xbf16>
    %c0_8 = arith.constant 0 : index
    %c0_9 = arith.constant 0 : index
    %11 = vector.load %arg5[%c0_8, %c0_9] : memref<1x128xf32, #tpu.memory_space<vmem>>, vector<1x128xf32>
    %cst_10 = arith.constant dense<0.000000e+00> : vector<8x128xf32>
    %12 = tpu.matmul %9, %10, %cst_10 {dimension_numbers = #tpu.dot_dimension_numbers<[1], [0], [0], [1], [0, 0, 1, 1], [], []>} : vector<8x256xbf16>, vector<256x128xbf16>, vector<8x128xf32> -> vector<8x128xf32>
    %13 = vector.broadcast %11 : vector<1x128xf32> to vector<8x128xf32>
    %14 = arith.addf %12, %13 : vector<8x128xf32>
    %cst_11 = arith.constant 0.000000e+00 : f32
    %15 = vector.broadcast %cst_11 : f32 to vector<8x128xf32>
    %16 = arith.maximumf %14, %15 : vector<8x128xf32>
    %17 = arith.truncf %16 : vector<8x128xf32> to vector<8x128xbf16>
    %c0_12 = arith.constant 0 : index
    %c0_13 = arith.constant 0 : index
    %18 = vector.load %arg6[%c0_12, %c0_13] : memref<128x64xbf16, #tpu.memory_space<vmem>>, vector<128x64xbf16>
    %c0_14 = arith.constant 0 : index
    %c0_15 = arith.constant 0 : index
    %19 = vector.load %arg7[%c0_14, %c0_15] : memref<1x64xf32, #tpu.memory_space<vmem>>, vector<1x64xf32>
    %cst_16 = arith.constant dense<0.000000e+00> : vector<8x64xf32>
    %20 = tpu.matmul %17, %18, %cst_16 {dimension_numbers = #tpu.dot_dimension_numbers<[1], [0], [0], [1], [0, 0, 1, 1], [], []>} : vector<8x128xbf16>, vector<128x64xbf16>, vector<8x64xf32> -> vector<8x64xf32>
    %21 = vector.broadcast %19 : vector<1x64xf32> to vector<8x64xf32>
    %22 = arith.addf %20, %21 : vector<8x64xf32>
    %cst_17 = arith.constant 0.000000e+00 : f32
    %23 = vector.broadcast %cst_17 : f32 to vector<8x64xf32>
    %24 = arith.maximumf %22, %23 : vector<8x64xf32>
    %25 = arith.truncf %24 : vector<8x64xf32> to vector<8x64xbf16>
    %c0_18 = arith.constant 0 : index
    %c0_19 = arith.constant 0 : index
    %26 = vector.load %arg8[%c0_18, %c0_19] : memref<64x32xbf16, #tpu.memory_space<vmem>>, vector<64x32xbf16>
    %c0_20 = arith.constant 0 : index
    %c0_21 = arith.constant 0 : index
    %27 = vector.load %arg9[%c0_20, %c0_21] : memref<1x32xf32, #tpu.memory_space<vmem>>, vector<1x32xf32>
    %cst_22 = arith.constant dense<0.000000e+00> : vector<8x32xf32>
    %28 = tpu.matmul %25, %26, %cst_22 {dimension_numbers = #tpu.dot_dimension_numbers<[1], [0], [0], [1], [0, 0, 1, 1], [], []>} : vector<8x64xbf16>, vector<64x32xbf16>, vector<8x32xf32> -> vector<8x32xf32>
    %29 = vector.broadcast %27 : vector<1x32xf32> to vector<8x32xf32>
    %30 = arith.addf %28, %29 : vector<8x32xf32>
    %cst_23 = arith.constant 0.000000e+00 : f32
    %31 = vector.broadcast %cst_23 : f32 to vector<8x32xf32>
    %32 = arith.maximumf %30, %31 : vector<8x32xf32>
    %33 = arith.truncf %32 : vector<8x32xf32> to vector<8x32xbf16>
    %c0_24 = arith.constant 0 : index
    %c0_25 = arith.constant 0 : index
    %34 = vector.load %arg10[%c0_24, %c0_25] : memref<32x16xbf16, #tpu.memory_space<vmem>>, vector<32x16xbf16>
    %c0_26 = arith.constant 0 : index
    %c0_27 = arith.constant 0 : index
    %35 = vector.load %arg11[%c0_26, %c0_27] : memref<1x16xf32, #tpu.memory_space<vmem>>, vector<1x16xf32>
    %cst_28 = arith.constant dense<0.000000e+00> : vector<8x16xf32>
    %36 = tpu.matmul %33, %34, %cst_28 {dimension_numbers = #tpu.dot_dimension_numbers<[1], [0], [0], [1], [0, 0, 1, 1], [], []>} : vector<8x32xbf16>, vector<32x16xbf16>, vector<8x16xf32> -> vector<8x16xf32>
    %37 = vector.broadcast %35 : vector<1x16xf32> to vector<8x16xf32>
    %38 = arith.addf %36, %37 : vector<8x16xf32>
    %cst_29 = arith.constant 0.000000e+00 : f32
    %39 = vector.broadcast %cst_29 : f32 to vector<8x16xf32>
    %40 = arith.maximumf %38, %39 : vector<8x16xf32>
    %41 = arith.truncf %40 : vector<8x16xf32> to vector<8x16xbf16>
    %c0_30 = arith.constant 0 : index
    %c0_31 = arith.constant 0 : index
    %42 = vector.load %arg12[%c0_30, %c0_31] : memref<16x8xbf16, #tpu.memory_space<vmem>>, vector<16x8xbf16>
    %c0_32 = arith.constant 0 : index
    %c0_33 = arith.constant 0 : index
    %43 = vector.load %arg13[%c0_32, %c0_33] : memref<1x8xf32, #tpu.memory_space<vmem>>, vector<1x8xf32>
    %cst_34 = arith.constant dense<0.000000e+00> : vector<8x8xf32>
    %44 = tpu.matmul %41, %42, %cst_34 {dimension_numbers = #tpu.dot_dimension_numbers<[1], [0], [0], [1], [0, 0, 1, 1], [], []>} : vector<8x16xbf16>, vector<16x8xbf16>, vector<8x8xf32> -> vector<8x8xf32>
    %45 = vector.broadcast %43 : vector<1x8xf32> to vector<8x8xf32>
    %46 = arith.addf %44, %45 : vector<8x8xf32>
    %cst_35 = arith.constant 0.000000e+00 : f32
    %47 = vector.broadcast %cst_35 : f32 to vector<8x8xf32>
    %48 = arith.maximumf %46, %47 : vector<8x8xf32>
    %49 = arith.truncf %48 : vector<8x8xf32> to vector<8x8xbf16>
    %c0_36 = arith.constant 0 : index
    %c0_37 = arith.constant 0 : index
    %50 = vector.load %arg14[%c0_36, %c0_37] : memref<8x4xbf16, #tpu.memory_space<vmem>>, vector<8x4xbf16>
    %c0_38 = arith.constant 0 : index
    %c0_39 = arith.constant 0 : index
    %51 = vector.load %arg15[%c0_38, %c0_39] : memref<1x4xf32, #tpu.memory_space<vmem>>, vector<1x4xf32>
    %cst_40 = arith.constant dense<0.000000e+00> : vector<8x4xf32>
    %52 = tpu.matmul %49, %50, %cst_40 {dimension_numbers = #tpu.dot_dimension_numbers<[1], [0], [0], [1], [0, 0, 1, 1], [], []>} : vector<8x8xbf16>, vector<8x4xbf16>, vector<8x4xf32> -> vector<8x4xf32>
    %53 = vector.broadcast %51 : vector<1x4xf32> to vector<8x4xf32>
    %54 = arith.addf %52, %53 : vector<8x4xf32>
    %cst_41 = arith.constant 0.000000e+00 : f32
    %55 = vector.broadcast %cst_41 : f32 to vector<8x4xf32>
    %56 = arith.maximumf %54, %55 : vector<8x4xf32>
    %57 = arith.truncf %56 : vector<8x4xf32> to vector<8x4xbf16>
    %c0_42 = arith.constant 0 : index
    %c0_43 = arith.constant 0 : index
    %58 = vector.load %arg16[%c0_42, %c0_43] : memref<4x128xbf16, #tpu.memory_space<vmem>>, vector<4x128xbf16>
    %c0_44 = arith.constant 0 : index
    %c0_45 = arith.constant 0 : index
    %59 = vector.load %arg17[%c0_44, %c0_45] : memref<1x128xf32, #tpu.memory_space<vmem>>, vector<1x128xf32>
    %cst_46 = arith.constant dense<0.000000e+00> : vector<8x128xf32>
    %60 = tpu.matmul %57, %58, %cst_46 {dimension_numbers = #tpu.dot_dimension_numbers<[1], [0], [0], [1], [0, 0, 1, 1], [], []>} : vector<8x4xbf16>, vector<4x128xbf16>, vector<8x128xf32> -> vector<8x128xf32>
    %61 = vector.broadcast %59 : vector<1x128xf32> to vector<8x128xf32>
    %62 = arith.addf %60, %61 : vector<8x128xf32>
    %cst_47 = arith.constant 0.000000e+00 : f32
    %63 = vector.broadcast %cst_47 : f32 to vector<8x128xf32>
    %64 = arith.maximumf %62, %63 : vector<8x128xf32>
    %c0_48 = arith.constant 0 : index
    %c0_49 = arith.constant 0 : index
    %65 = vector.load %arg18[%c0_48, %c0_49] : memref<8x128xf32, #tpu.memory_space<vmem>>, vector<8x128xf32>
    tpu.vector_store %arg18[%c0_48, %c0_49], %64 {strides = array<i32>} : memref<8x128xf32, #tpu.memory_space<vmem>>, vector<8x128xf32>,
    return
  }
  func.func @transform_0(%arg0: i32) -> (i32, i32) {
    %c0_i32 = arith.constant 0 : i32
    %c0_i32_0 = arith.constant 0 : i32
    return %arg0, %c0_i32 : i32, i32
  }
  func.func @transform_1(%arg0: i32) -> (i32, i32) {
    %c0_i32 = arith.constant 0 : i32
    %c0_i32_0 = arith.constant 0 : i32
    %c0_i32_1 = arith.constant 0 : i32
    return %c0_i32, %c0_i32_0 : i32, i32
  }
  func.func @transform_2(%arg0: i32) -> (i32, i32) {
    %c0_i32 = arith.constant 0 : i32
    %c0_i32_0 = arith.constant 0 : i32
    %c0_i32_1 = arith.constant 0 : i32
    return %c0_i32, %c0_i32_0 : i32, i32
  }
  func.func @transform_3(%arg0: i32) -> (i32, i32) {
    %c0_i32 = arith.constant 0 : i32
    %c0_i32_0 = arith.constant 0 : i32
    %c0_i32_1 = arith.constant 0 : i32
    return %c0_i32, %c0_i32_0 : i32, i32
  }
  func.func @transform_4(%arg0: i32) -> (i32, i32) {
    %c0_i32 = arith.constant 0 : i32
    %c0_i32_0 = arith.constant 0 : i32
    %c0_i32_1 = arith.constant 0 : i32
    return %c0_i32, %c0_i32_0 : i32, i32
  }
  func.func @transform_5(%arg0: i32) -> (i32, i32) {
    %c0_i32 = arith.constant 0 : i32
    %c0_i32_0 = arith.constant 0 : i32
    %c0_i32_1 = arith.constant 0 : i32
    return %c0_i32, %c0_i32_0 : i32, i32
  }
  func.func @transform_6(%arg0: i32) -> (i32, i32) {
    %c0_i32 = arith.constant 0 : i32
    %c0_i32_0 = arith.constant 0 : i32
    %c0_i32_1 = arith.constant 0 : i32
    return %c0_i32, %c0_i32_0 : i32, i32
  }
  func.func @transform_7(%arg0: i32) -> (i32, i32) {
    %c0_i32 = arith.constant 0 : i32
    %c0_i32_0 = arith.constant 0 : i32
    %c0_i32_1 = arith.constant 0 : i32
    return %c0_i32, %c0_i32_0 : i32, i32
  }
  func.func @transform_8(%arg0: i32) -> (i32, i32) {
    %c0_i32 = arith.constant 0 : i32
    %c0_i32_0 = arith.constant 0 : i32
    %c0_i32_1 = arith.constant 0 : i32
    return %c0_i32, %c0_i32_0 : i32, i32
  }
  func.func @transform_9(%arg0: i32) -> (i32, i32) {
    %c0_i32 = arith.constant 0 : i32
    %c0_i32_0 = arith.constant 0 : i32
    %c0_i32_1 = arith.constant 0 : i32
    return %c0_i32, %c0_i32_0 : i32, i32
  }
  func.func @transform_10(%arg0: i32) -> (i32, i32) {
    %c0_i32 = arith.constant 0 : i32
    %c0_i32_0 = arith.constant 0 : i32
    %c0_i32_1 = arith.constant 0 : i32
    return %c0_i32, %c0_i32_0 : i32, i32
  }
  func.func @transform_11(%arg0: i32) -> (i32, i32) {
    %c0_i32 = arith.constant 0 : i32
    %c0_i32_0 = arith.constant 0 : i32
    %c0_i32_1 = arith.constant 0 : i32
    return %c0_i32, %c0_i32_0 : i32, i32
  }
  func.func @transform_12(%arg0: i32) -> (i32, i32) {
    %c0_i32 = arith.constant 0 : i32
    %c0_i32_0 = arith.constant 0 : i32
    %c0_i32_1 = arith.constant 0 : i32
    return %c0_i32, %c0_i32_0 : i32, i32
  }
  func.func @transform_13(%arg0: i32) -> (i32, i32) {
    %c0_i32 = arith.constant 0 : i32
    %c0_i32_0 = arith.constant 0 : i32
    %c0_i32_1 = arith.constant 0 : i32
    return %c0_i32, %c0_i32_0 : i32, i32
  }
  func.func @transform_14(%arg0: i32) -> (i32, i32) {
    %c0_i32 = arith.constant 0 : i32
    %c0_i32_0 = arith.constant 0 : i32
    %c0_i32_1 = arith.constant 0 : i32
    return %c0_i32, %c0_i32_0 : i32, i32
  }
  func.func @transform_15(%arg0: i32) -> (i32, i32) {
    %c0_i32 = arith.constant 0 : i32
    %c0_i32_0 = arith.constant 0 : i32
    %c0_i32_1 = arith.constant 0 : i32
    return %c0_i32, %c0_i32_0 : i32, i32
  }
  func.func @transform_16(%arg0: i32) -> (i32, i32) {
    %c0_i32 = arith.constant 0 : i32
    %c0_i32_0 = arith.constant 0 : i32
    %c0_i32_1 = arith.constant 0 : i32
    return %c0_i32, %c0_i32_0 : i32, i32
  }
  func.func @transform_17(%arg0: i32) -> (i32, i32) {
    %c0_i32 = arith.constant 0 : i32
    %c0_i32_0 = arith.constant 0 : i32
    return %arg0, %c0_i32 : i32, i32
  }
}

</mosaic_0001>

<bundles_post_ra>
// kernel: encoder_forward.1
= control target key start
LH: loop header
LB: loop body
LE: loop exit
PB: predicated region body
PF: predicated region fallthrough
CT: control target
= control target key end

     0   :  { %vm665_vm0 = vcmask 130048   ;;  %vm1134_vm1 = vcmask 523264   ;;  %vm1173_vm2 = vcmask 261120   ;;  %vm1231_vm3 = vcmask 1043456   ;;  %s2797_s1 = inlined_call_operand.vmem [shape: bf16[784,256], index: 1, kind: input, shape index: {}]   ;;  %s2798_s0 = inlined_call_operand.vmem [shape: f32[8,784], index: 0, kind: input, shape index: {}]   ;;  %s2799_s4 = inlined_call_operand.vmem [shape: f32[1,128], index: 4, kind: input, shape index: {}]   ;;  %s2800_s3 = inlined_call_operand.vmem [shape: bf16[256,128], index: 3, kind: input, shape index: {}]   ;;  %s2801_s2 = inlined_call_operand.vmem [shape: f32[1,256], index: 2, kind: input, shape index: {}]   ;;  %s2802_s6 = inlined_call_operand.vmem [shape: f32[1,64], index: 6, kind: input, shape index: {}]   ;;  %s2803_s5 = inlined_call_operand.vmem [shape: bf16[128,64], index: 5, kind: input, shape index: {}]   ;;  %s2804_s7 = inlined_call_operand.vmem [shape: bf16[64,32], index: 7, kind: input, shape index: {}]   ;;  %s2805_s8 = inlined_call_operand.vmem [shape: f32[1,32], index: 8, kind: input, shape index: {}]   ;;  %s2806_s9 = inlined_call_operand.vmem [shape: bf16[32,16], index: 9, kind: input, shape index: {}]   ;;  %s2807_s10 = inlined_call_operand.vmem [shape: f32[1,16], index: 10, kind: input, shape index: {}]   ;;  %s2808_s11 = inlined_call_operand.vmem [shape: bf16[16,8], index: 11, kind: input, shape index: {}]   ;;  %s2809_s12 = inlined_call_operand.vmem [shape: f32[1,8], index: 12, kind: input, shape index: {}]   ;;  %s2810_s13 = inlined_call_operand.vmem [shape: bf16[8,4], index: 13, kind: input, shape index: {}]   ;;  %s2811_s14 = inlined_call_operand.vmem [shape: f32[1,4], index: 14, kind: input, shape index: {}]   ;;  %s2812_s15 = inlined_call_operand.vmem [shape: bf16[4,128], index: 15, kind: input, shape index: {}]   ;;  %s2813_s16 = inlined_call_operand.vmem [shape: f32[1,128], index: 16, kind: input, shape index: {}]   ;;  %s2814_s17 = inlined_call_operand.vmem [shape: f32[8,128], index: 17, kind: output, shape index: {}]  }
   0x1   :  { %2817 = sst [smem:[#allocation2_spill]] %s2797_s1  ;;  %vm1259_vm4 = vcmask 1041408   ;;  %vm1227_vm5 = vcmask 64512   ;;  %vm1255_vm6 = vcmask 31744  }
   0x2   :  { %2818 = sst [smem:[#allocation3_spill]] %s2798_s0 }
   0x3   :  { %s2819_s26 = sld [smem:[#allocation2_spill]] }
   0x4   :  { %s2820_s22 = sld [smem:[#allocation3_spill]] }
   0x9   :  { %v1340_v0 = vld [vmem:[%s2819_s26 + $0x70] sm:$0xf]  ;;  %v1820_v1 = vld [vmem:[%s2819_s26 + $0x74] sm:$0xf0]  ;;  %v1332_v11 = vld [vmem:[%s2819_s26 + $0x60] sm:$0xf] }
   0xa   :  { %v1468_v2 = vld [vmem:[%s2819_s26 + $0x170] sm:$0xf]  ;;  %v1341_v3 = vor.u32 %v1820_v1, %v1340_v0  ;;  %v1852_v4 = vld [vmem:[%s2819_s26 + $0x174] sm:$0xf0]  ;;  %v1818_v13 = vld [vmem:[%s2819_s26 + $0x64] sm:$0xf0] }
   0xb   :  { %v1532_v5 = vld [vmem:[%s2819_s26 + $0x1f0] sm:$0xf]  ;;  %v1868_v6 = vld [vmem:[%s2819_s26 + $0x1f4] sm:$0xf0]  ;;  %v1469_v7 = vor.u32 %v1852_v4, %v1468_v2  ;;  %v1460_v14 = vld [vmem:[%s2819_s26 + $0x160] sm:$0xf]  ;;  %v1333_v16 = vor.u32 %v1818_v13, %v1332_v11 }
   0xc   :  { %v1533_v8 = vor.u32 %v1868_v6, %v1532_v5  ;;  %v1404_v9 = vld [vmem:[%s2819_s26 + $0xf0] sm:$0xf]  ;;  %v1836_v10 = vld [vmem:[%s2819_s26 + $0xf4] sm:$0xf0]  ;;  %669 = vmatpush.bf16.msra.mxu0 %v1341_v3  ;;  %v1850_v15 = vld [vmem:[%s2819_s26 + $0x164] sm:$0xf0] }
   0xd   :  { %v1405_v12 = vor.u32 %v1836_v10, %v1404_v9  ;;  %695 = vmatpush.bf16.msra.mxu2 %v1469_v7  ;;  %v1461_v17 = vor.u32 %v1850_v15, %v1460_v14  ;;  %v1524_v18 = vld [vmem:[%s2819_s26 + $0x1e0] sm:$0xf]  ;;  %v1866_v19 = vld [vmem:[%s2819_s26 + $0x1e4] sm:$0xf0]  ;;  %v1324_v23 = vld [vmem:[%s2819_s26 + $0x50] sm:$0xf] }
   0xe   :  { %708 = vmatpush.bf16.msra.mxu3 %v1533_v8  ;;  %v1396_v20 = vld [vmem:[%s2819_s26 + $0xe0] sm:$0xf]  ;;  %v1525_v21 = vor.u32 %v1866_v19, %v1524_v18  ;;  %v1834_v22 = vld [vmem:[%s2819_s26 + $0xe4] sm:$0xf0]  ;;  %v1816_v24 = vld [vmem:[%s2819_s26 + $0x54] sm:$0xf0] }
   0xf   :  { %682 = vmatpush.bf16.msra.mxu1 %v1405_v12  ;;  %v1397_v25 = vor.u32 %v1834_v22, %v1396_v20  ;;  %v1452_v26 = vld [vmem:[%s2819_s26 + $0x150] sm:$0xf]  ;;  %v1848_v27 = vld [vmem:[%s2819_s26 + $0x154] sm:$0xf0]  ;;  %v1325_v29 = vor.u32 %v1816_v24, %v1324_v23  ;;  %v1316_v35 = vld [vmem:[%s2819_s26 + $0x40] sm:$0xf] }
  0x10   :  { %v1516_v28 = vld [vmem:[%s2819_s26 + $0x1d0] sm:$0xf]  ;;  %670 = vmatpush.bf16.msra.mxu0 %v1333_v16  ;;  %v1864_v30 = vld [vmem:[%s2819_s26 + $0x1d4] sm:$0xf0]  ;;  %v1453_v33 = vor.u32 %v1848_v27, %v1452_v26  ;;  %v1814_v36 = vld [vmem:[%s2819_s26 + $0x44] sm:$0xf0] }
  0x11   :  { %v1388_v31 = vld [vmem:[%s2819_s26 + $0xd0] sm:$0xf]  ;;  %v1832_v32 = vld [vmem:[%s2819_s26 + $0xd4] sm:$0xf0]  ;;  %696 = vmatpush.bf16.msra.mxu2 %v1461_v17  ;;  %v1517_v34 = vor.u32 %v1864_v30, %v1516_v28  ;;  %v1444_v37 = vld [vmem:[%s2819_s26 + $0x140] sm:$0xf]  ;;  %v1317_v44 = vor.u32 %v1814_v36, %v1316_v35 }
  0x12   :  { %709 = vmatpush.bf16.msra.mxu3 %v1525_v21  ;;  %v1389_v38 = vor.u32 %v1832_v32, %v1388_v31  ;;  %v1846_v39 = vld [vmem:[%s2819_s26 + $0x144] sm:$0xf0]  ;;  %v1508_v40 = vld [vmem:[%s2819_s26 + $0x1c0] sm:$0xf]  ;;  %v1308_v47 = vld [vmem:[%s2819_s26 + $0x30] sm:$0xf] }
  0x13   :  { %683 = vmatpush.bf16.msra.mxu1 %v1397_v25  ;;  %v1862_v41 = vld [vmem:[%s2819_s26 + $0x1c4] sm:$0xf0]  ;;  %v1380_v42 = vld [vmem:[%s2819_s26 + $0xc0] sm:$0xf]  ;;  %v1445_v45 = vor.u32 %v1846_v39, %v1444_v37  ;;  %v1812_v48 = vld [vmem:[%s2819_s26 + $0x34] sm:$0xf0] }
  0x14   :  { %v1830_v43 = vld [vmem:[%s2819_s26 + $0xc4] sm:$0xf0]  ;;  %671 = vmatpush.bf16.msra.mxu0 %v1325_v29  ;;  %v1509_v46 = vor.u32 %v1862_v41, %v1508_v40  ;;  %v1436_v49 = vld [vmem:[%s2819_s26 + $0x130] sm:$0xf]  ;;  %v1844_v51 = vld [vmem:[%s2819_s26 + $0x134] sm:$0xf0]  ;;  %v1309_v56 = vor.u32 %v1812_v48, %v1308_v47 }
  0x15   :  { %697 = vmatpush.bf16.msra.mxu2 %v1453_v33  ;;  %v1381_v50 = vor.u32 %v1830_v43, %v1380_v42  ;;  %v1500_v52 = vld [vmem:[%s2819_s26 + $0x1b0] sm:$0xf]  ;;  %v1860_v53 = vld [vmem:[%s2819_s26 + $0x1b4] sm:$0xf0]  ;;  %v1437_v57 = vor.u32 %v1844_v51, %v1436_v49  ;;  %v1300_v59 = vld [vmem:[%s2819_s26 + $0x20] sm:$0xf] }
  0x16   :  { %710 = vmatpush.bf16.msra.mxu3 %v1517_v34  ;;  %v1372_v54 = vld [vmem:[%s2819_s26 + $0xb0] sm:$0xf]  ;;  %v1828_v55 = vld [vmem:[%s2819_s26 + $0xb4] sm:$0xf0]  ;;  %v1501_v58 = vor.u32 %v1860_v53, %v1500_v52  ;;  %v1810_v60 = vld [vmem:[%s2819_s26 + $0x24] sm:$0xf0] }
  0x17   :  { %684 = vmatpush.bf16.msra.mxu1 %v1389_v38  ;;  %v1428_v61 = vld [vmem:[%s2819_s26 + $0x120] sm:$0xf]  ;;  %v1373_v62 = vor.u32 %v1828_v55, %v1372_v54  ;;  %v1842_v63 = vld [vmem:[%s2819_s26 + $0x124] sm:$0xf0]  ;;  %v1301_v4 = vor.u32 %v1810_v60, %v1300_v59  ;;  %v1292_v7 = vld [vmem:[%s2819_s26 + $0x10] sm:$0xf] }
  0x18   :  { %672 = vmatpush.bf16.msra.mxu0 %v1317_v44  ;;  %v1492_v0 = vld [vmem:[%s2819_s26 + $0x1a0] sm:$0xf]  ;;  %v1858_v1 = vld [vmem:[%s2819_s26 + $0x1a4] sm:$0xf0]  ;;  %v1429_v5 = vor.u32 %v1842_v63, %v1428_v61  ;;  %v1808_v8 = vld [vmem:[%s2819_s26 + $0x14] sm:$0xf0] }
  0x19   :  { %698 = vmatpush.bf16.msra.mxu2 %v1445_v45  ;;  %v1364_v2 = vld [vmem:[%s2819_s26 + $0xa0] sm:$0xf]  ;;  %v1826_v3 = vld [vmem:[%s2819_s26 + $0xa4] sm:$0xf0]  ;;  %v1493_v6 = vor.u32 %v1858_v1, %v1492_v0  ;;  %v1420_v9 = vld [vmem:[%s2819_s26 + $0x110] sm:$0xf]  ;;  %v1293_v16 = vor.u32 %v1808_v8, %v1292_v7 }
  0x1a   :  { %711 = vmatpush.bf16.msra.mxu3 %v1509_v46  ;;  %v1365_v10 = vor.u32 %v1826_v3, %v1364_v2  ;;  %v1840_v11 = vld [vmem:[%s2819_s26 + $0x114] sm:$0xf0]  ;;  %v1484_v12 = vld [vmem:[%s2819_s26 + $0x190] sm:$0xf]  ;;  %v1284_v17 = vld [vmem:[%s2819_s26] sm:$0xf] }
  0x1b   :  { %685 = vmatpush.bf16.msra.mxu1 %v1381_v50  ;;  %v1856_v13 = vld [vmem:[%s2819_s26 + $0x194] sm:$0xf0]  ;;  %v1356_v14 = vld [vmem:[%s2819_s26 + $0x90] sm:$0xf]  ;;  %v1806_v18 = vld [vmem:[%s2819_s26 + $0x4] sm:$0xf0]  ;;  %v1421_v20 = vor.u32 %v1840_v11, %v1420_v9 }
  0x1c   :  { %673 = vmatpush.bf16.msra.mxu0 %v1309_v56  ;;  %v1824_v15 = vld [vmem:[%s2819_s26 + $0x94] sm:$0xf0]  ;;  %v1412_v19 = vld [vmem:[%s2819_s26 + $0x100] sm:$0xf]  ;;  %v1485_v21 = vor.u32 %v1856_v13, %v1484_v12  ;;  %v1838_v22 = vld [vmem:[%s2819_s26 + $0x104] sm:$0xf0]  ;;  %v1285_v32 = vor.u32 %v1806_v18, %v1284_v17 }
  0x1d   :  { %699 = vmatpush.bf16.msra.mxu2 %v1437_v57  ;;  %v1476_v23 = vld [vmem:[%s2819_s26 + $0x180] sm:$0xf]  ;;  %v1854_v24 = vld [vmem:[%s2819_s26 + $0x184] sm:$0xf0]  ;;  %v1357_v25 = vor.u32 %v1824_v15, %v1356_v14  ;;  %v1596_v26 = vld [vmem:[%s2819_s26 + $0x270] sm:$0xf]  ;;  %v1413_v36 = vor.u32 %v1838_v22, %v1412_v19 }
  0x1e   :  { %712 = vmatpush.bf16.msra.mxu3 %v1501_v58  ;;  %v1884_v27 = vld [vmem:[%s2819_s26 + $0x274] sm:$0xf0]  ;;  %v1819_v28 = vld [vmem:[%s2819_s26 + $0x74] sm:$0xf]  ;;  %v1342_v29 = vld [vmem:[%s2819_s26 + $0x78] sm:$0xf0]  ;;  %v1477_v37 = vor.u32 %v1854_v24, %v1476_v23 }
  0x1f   :  { %686 = vmatpush.bf16.msra.mxu1 %v1373_v62  ;;  %v1348_v30 = vld [vmem:[%s2819_s26 + $0x80] sm:$0xf]  ;;  %v1822_v31 = vld [vmem:[%s2819_s26 + $0x84] sm:$0xf0]  ;;  %v59_v33 = vld [vmem:[%s2820_s22 + $0x10] sm:$0xff]  ;;  %v1597_v41 = vor.u32 %v1884_v27, %v1596_v26  ;;  %v1345_v42 = vor.u32 %v1819_v28, %v1342_v29 }
  0x20   :  { %674 = vmatpush.bf16.msra.mxu0 %v1301_v4  ;;  %v1668_v34 = vld [vmem:[%s2819_s26 + $0x300] sm:$0xf]  ;;  %v1902_v35 = vld [vmem:[%s2819_s26 + $0x304] sm:$0xf0]  ;;  %v1660_v38 = vld [vmem:[%s2819_s26 + $0x2f0] sm:$0xf]  ;;  %v1349_v46 = vor.u32 %v1822_v31, %v1348_v30  ;;  %v2271_v51 = vpack.c.bf16 %v59_v33, %v59_v33 }
  0x21   :  { %700 = vmatpush.bf16.msra.mxu2 %v1429_v5  ;;  %v1900_v39 = vld [vmem:[%s2819_s26 + $0x2f4] sm:$0xf0]  ;;  %v1835_v40 = vld [vmem:[%s2819_s26 + $0xf4] sm:$0xf]  ;;  %v1406_v43 = vld [vmem:[%s2819_s26 + $0xf8] sm:$0xf0]  ;;  %v1669_v47 = vor.u32 %v1902_v35, %v1668_v34 }
  0x22   :  { %713 = vmatpush.bf16.msra.mxu3 %v1493_v6  ;;  %v1588_v44 = vld [vmem:[%s2819_s26 + $0x260] sm:$0xf]  ;;  %v1882_v48 = vld [vmem:[%s2819_s26 + $0x264] sm:$0xf0]  ;;  %v1817_v49 = vld [vmem:[%s2819_s26 + $0x64] sm:$0xf]  ;;  %v1661_v52 = vor.u32 %v1900_v39, %v1660_v38  ;;  %v1409_v55 = vor.u32 %v1835_v40, %v1406_v43 }
  0x23   :  { %687 = vmatpush.bf16.msra.mxu1 %v1365_v10  ;;  %v57_v45 = vld [vmem:[%s2820_s22] sm:$0xff]  ;;  %v1334_v50 = vld [vmem:[%s2819_s26 + $0x68] sm:$0xf0]  ;;  %v60_v53 = vld [vmem:[%s2820_s22 + $0x18] sm:$0xff]  ;;  %v1589_v59 = vor.u32 %v1882_v48, %v1588_v44 }
  0x24   :  { %675 = vmatpush.bf16.msra.mxu0 %v1293_v16  ;;  %v58_v54 = vld [vmem:[%s2820_s22 + $0x8] sm:$0xff]  ;;  %v1652_v56 = vld [vmem:[%s2819_s26 + $0x2e0] sm:$0xf]  ;;  %v2285_v58 = vpack.c.bf16 %v57_v45, %v57_v45  ;;  %v1337_v60 = vor.u32 %v1817_v49, %v1334_v50  ;;  %v1833_v61 = vld [vmem:[%s2819_s26 + $0xe4] sm:$0xf]  ;;  %v2305_v3 = vpack.c.bf16 %v60_v53, %v60_v53 }
  0x25   :  { %701 = vmatpush.bf16.msra.mxu2 %v1421_v20  ;;  %v1898_v57 = vld [vmem:[%s2819_s26 + $0x2e4] sm:$0xf0]  ;;  %v1398_v62 = vld [vmem:[%s2819_s26 + $0xe8] sm:$0xf0]  ;;  %v1580_v63 = vld [vmem:[%s2819_s26 + $0x250] sm:$0xf]  ;;  %v2307_v4 = vpack.c.bf16 %v58_v54, %v58_v54 }
  0x26   :  { %714 = vmatpush.bf16.msra.mxu3 %v1485_v21  ;;  %v1880_v0 = vld [vmem:[%s2819_s26 + $0x254] sm:$0xf0]  ;;  %v1815_v1 = vld [vmem:[%s2819_s26 + $0x54] sm:$0xf]  ;;  %v1326_v2 = vld [vmem:[%s2819_s26 + $0x58] sm:$0xf0]  ;;  %v1653_v5 = vor.u32 %v1898_v57, %v1652_v56  ;;  %v1401_v6 = vor.u32 %v1833_v61, %v1398_v62 }
  0x27   :  { %688 = vmatpush.bf16.msra.mxu1 %v1357_v25  ;;  %v1644_v7 = vld [vmem:[%s2819_s26 + $0x2d0] sm:$0xf]  ;;  %v1896_v8 = vld [vmem:[%s2819_s26 + $0x2d4] sm:$0xf0]  ;;  %v1581_v9 = vor.u32 %v1880_v0, %v1580_v63  ;;  %v1329_v10 = vor.u32 %v1815_v1, %v1326_v2  ;;  %v1831_v11 = vld [vmem:[%s2819_s26 + $0xd4] sm:$0xf] }
  0x28   :  { %676 = vmatpush.bf16.msra.mxu0 %v1285_v32  ;;  %v1390_v12 = vld [vmem:[%s2819_s26 + $0xd8] sm:$0xf0]  ;;  %v1572_v13 = vld [vmem:[%s2819_s26 + $0x240] sm:$0xf]  ;;  %v1878_v14 = vld [vmem:[%s2819_s26 + $0x244] sm:$0xf0]  ;;  %v1645_v17 = vor.u32 %v1896_v8, %v1644_v7 }
  0x29   :  { %702 = vmatpush.bf16.msra.mxu2 %v1413_v36  ;;  %v1813_v15 = vld [vmem:[%s2819_s26 + $0x44] sm:$0xf]  ;;  %v1318_v16 = vld [vmem:[%s2819_s26 + $0x48] sm:$0xf0]  ;;  %v1393_v18 = vor.u32 %v1831_v11, %v1390_v12  ;;  %v1636_v19 = vld [vmem:[%s2819_s26 + $0x2c0] sm:$0xf]  ;;  %v1573_v21 = vor.u32 %v1878_v14, %v1572_v13 }
  0x2a   :  { %715 = vmatpush.bf16.msra.mxu3 %v1477_v37  ;;  %v1894_v20 = vld [vmem:[%s2819_s26 + $0x2c4] sm:$0xf0]  ;;  %v1321_v22 = vor.u32 %v1813_v15, %v1318_v16  ;;  %v1829_v23 = vld [vmem:[%s2819_s26 + $0xc4] sm:$0xf]  ;;  %v1382_v24 = vld [vmem:[%s2819_s26 + $0xc8] sm:$0xf0] }
  0x2b   :  { %689 = vmatpush.bf16.msra.mxu1 %v1349_v46  ;;  %677 = vmatmul.bf16.vlgmr.msra.gmra.mxu0 %v2285_v58  ;;  %v1564_v25 = vld [vmem:[%s2819_s26 + $0x230] sm:$0xf]  ;;  %v1876_v26 = vld [vmem:[%s2819_s26 + $0x234] sm:$0xf0]  ;;  %v1811_v27 = vld [vmem:[%s2819_s26 + $0x34] sm:$0xf]  ;;  %v1637_v29 = vor.u32 %v1894_v20, %v1636_v19  ;;  %v1385_v30 = vor.u32 %v1829_v23, %v1382_v24 }
  0x2c   :  { %721 = vmatpush.bf16.msrb.mxu0 %v1597_v41  ;;  %703 = vmatmul.bf16.vlgmr.msra.gmra.mxu2 %v2271_v51  ;;  %v1310_v28 = vld [vmem:[%s2819_s26 + $0x38] sm:$0xf0]  ;;  %v1628_v31 = vld [vmem:[%s2819_s26 + $0x2b0] sm:$0xf]  ;;  %v1892_v32 = vld [vmem:[%s2819_s26 + $0x2b4] sm:$0xf0]  ;;  %v1565_v34 = vor.u32 %v1876_v26, %v1564_v25 }
  0x2d   :  { %754 = vmatpush.bf16.msrb.mxu2 %v1669_v47  ;;  %716 = vmatmul.bf16.vlgmr.msra.gmra.mxu3 %v2305_v3  ;;  %v63_v33 = vld [vmem:[%s2820_s22 + $0x30] sm:$0xff]  ;;  %v1313_v35 = vor.u32 %v1811_v27, %v1310_v28  ;;  %v1374_v37 = vld [vmem:[%s2819_s26 + $0xb8] sm:$0xf0]  ;;  %v1556_v38 = vld [vmem:[%s2819_s26 + $0x220] sm:$0xf] }
  0x2e   :  { %760 = vmatpush.bf16.msrb.mxu3 %v1345_v42  ;;  %690 = vmatmul.bf16.vlgmr.msra.gmra.mxu1 %v2307_v4  ;;  %v1827_v36 = vld [vmem:[%s2819_s26 + $0xb4] sm:$0xf]  ;;  %v1874_v39 = vld [vmem:[%s2819_s26 + $0x224] sm:$0xf0]  ;;  %v1809_v40 = vld [vmem:[%s2819_s26 + $0x24] sm:$0xf]  ;;  %v1629_v42 = vor.u32 %v1892_v32, %v1628_v31  ;;  %v2388_v43 = vpack.c.bf16 %v63_v33, %v63_v33 }
  0x2f   :  { %734 = vmatpush.bf16.msrb.mxu1 %v1661_v52  ;;  %v1302_v41 = vld [vmem:[%s2819_s26 + $0x28] sm:$0xf0]  ;;  %v1377_v44 = vor.u32 %v1827_v36, %v1374_v37  ;;  %v1620_v45 = vld [vmem:[%s2819_s26 + $0x2a0] sm:$0xf]  ;;  %v1890_v46 = vld [vmem:[%s2819_s26 + $0x2a4] sm:$0xf0]  ;;  %v1557_v47 = vor.u32 %v1874_v39, %v1556_v38 }
  0x30   :  { %722 = vmatpush.bf16.msrb.mxu0 %v1589_v59  ;;  %v1305_v48 = vor.u32 %v1809_v40, %v1302_v41  ;;  %v1825_v49 = vld [vmem:[%s2819_s26 + $0xa4] sm:$0xf]  ;;  %v1366_v50 = vld [vmem:[%s2819_s26 + $0xa8] sm:$0xf0]  ;;  %v1548_v52 = vld [vmem:[%s2819_s26 + $0x210] sm:$0xf]  ;;  %v1621_v56 = vor.u32 %v1890_v46, %v1620_v45 }
  0x31   :  { %773 = vmatpush.bf16.msra.mxu2 %v1409_v55  ;;  %v1872_v53 = vld [vmem:[%s2819_s26 + $0x214] sm:$0xf0]  ;;  %v1807_v54 = vld [vmem:[%s2819_s26 + $0x14] sm:$0xf]  ;;  %v1294_v55 = vld [vmem:[%s2819_s26 + $0x18] sm:$0xf0]  ;;  %v1369_v57 = vor.u32 %v1825_v49, %v1366_v50 }
  0x32   :  { %761 = vmatpush.bf16.msrb.mxu3 %v1337_v60  ;;  %v1612_v59 = vld [vmem:[%s2819_s26 + $0x290] sm:$0xf]  ;;  %v1888_v60 = vld [vmem:[%s2819_s26 + $0x294] sm:$0xf0]  ;;  %v1823_v61 = vld [vmem:[%s2819_s26 + $0x94] sm:$0xf]  ;;  %v1549_v62 = vor.u32 %v1872_v53, %v1548_v52  ;;  %v1297_v63 = vor.u32 %v1807_v54, %v1294_v55 }
  0x33   :  { %735 = vmatpush.bf16.msrb.mxu1 %v1653_v5  ;;  %v1358_v0 = vld [vmem:[%s2819_s26 + $0x98] sm:$0xf0]  ;;  %v1540_v1 = vld [vmem:[%s2819_s26 + $0x200] sm:$0xf]  ;;  %v1870_v2 = vld [vmem:[%s2819_s26 + $0x204] sm:$0xf0]  ;;  %v1613_v8 = vor.u32 %v1888_v60, %v1612_v59 }
  0x34   :  { %723 = vmatpush.bf16.msrb.mxu0 %v1581_v9  ;;  %v1805_v5 = vld [vmem:[%s2819_s26 + $0x4] sm:$0xf]  ;;  %v1851_v7 = vld [vmem:[%s2819_s26 + $0x174] sm:$0xf]  ;;  %v1470_v9 = vld [vmem:[%s2819_s26 + $0x178] sm:$0xf0]  ;;  %v1361_v12 = vor.u32 %v1823_v61, %v1358_v0  ;;  %v1541_v16 = vor.u32 %v1870_v2, %v1540_v1 }
  0x35   :  { %774 = vmatpush.bf16.msra.mxu2 %v1401_v6  ;;  %v1286_v6 = vld [vmem:[%s2819_s26 + $0x8] sm:$0xf0]  ;;  %v1598_v11 = vld [vmem:[%s2819_s26 + $0x278] sm:$0xf0]  ;;  %v1604_v13 = vld [vmem:[%s2819_s26 + $0x280] sm:$0xf] }
  0x36   :  { %762 = vmatpush.bf16.msrb.mxu3 %v1329_v10  ;;  %v1883_v10 = vld [vmem:[%s2819_s26 + $0x274] sm:$0xf]  ;;  %v1886_v14 = vld [vmem:[%s2819_s26 + $0x284] sm:$0xf0]  ;;  %v61_v15 = vld [vmem:[%s2820_s22 + $0x20] sm:$0xff] }
  0x37   :  { %736 = vmatpush.bf16.msrb.mxu1 %v1645_v17  ;;  %v1289_v17 = vor.u32 %v1805_v5, %v1286_v6  ;;  %v1350_v19 = vld [vmem:[%s2819_s26 + $0x88] sm:$0xf0]  ;;  %v1867_v20 = vld [vmem:[%s2819_s26 + $0x1f4] sm:$0xf]  ;;  %v1534_v23 = vld [vmem:[%s2819_s26 + $0x1f8] sm:$0xf0]  ;;  %v1605_v26 = vor.u32 %v1886_v14, %v1604_v13 }
  0x38   :  { %724 = vmatpush.bf16.msrb.mxu0 %v1573_v21  ;;  %v1473_v21 = vor.u32 %v1851_v7, %v1470_v9  ;;  %v1899_v24 = vld [vmem:[%s2819_s26 + $0x2f4] sm:$0xf]  ;;  %v1662_v25 = vld [vmem:[%s2819_s26 + $0x2f8] sm:$0xf0]  ;;  %v62_v27 = vld [vmem:[%s2820_s22 + $0x28] sm:$0xff] }
  0x39   :  { %775 = vmatpush.bf16.msra.mxu2 %v1393_v18  ;;  %v1821_v18 = vld [vmem:[%s2819_s26 + $0x84] sm:$0xf]  ;;  %v1590_v33 = vld [vmem:[%s2819_s26 + $0x268] sm:$0xf0]  ;;  %v2499_v37 = vpack.c.bf16 %v62_v27, %v62_v27  ;;  %v1454_v45 = vld [vmem:[%s2819_s26 + $0x158] sm:$0xf0] }
  0x3a   :  { %763 = vmatpush.bf16.msrb.mxu3 %v1321_v22  ;;  %v1601_v22 = vor.u32 %v1883_v10, %v1598_v11  ;;  %v1849_v28 = vld [vmem:[%s2819_s26 + $0x164] sm:$0xf]  ;;  %v1353_v31 = vor.u32 %v1821_v18, %v1350_v19  ;;  %v1526_v39 = vld [vmem:[%s2819_s26 + $0x1e8] sm:$0xf0]  ;;  %v1879_v46 = vld [vmem:[%s2819_s26 + $0x254] sm:$0xf] }
  0x3b   :  { %737 = vmatpush.bf16.msrb.mxu1 %v1637_v29  ;;  %v1462_v29 = vld [vmem:[%s2819_s26 + $0x168] sm:$0xf0]  ;;  %v1881_v32 = vld [vmem:[%s2819_s26 + $0x264] sm:$0xf]  ;;  %v1863_v50 = vld [vmem:[%s2819_s26 + $0x1d4] sm:$0xf] }
  0x3c   :  { %725 = vmatpush.bf16.msrb.mxu0 %v1565_v34  ;;  %1674 = vmatmul.msk.bf16.vlgmr.msrb.gmra.mxu2 %vm665_vm0, %v2388_v43  ;;  %v1537_v34 = vor.u32 %v1867_v20, %v1534_v23  ;;  %v1865_v36 = vld [vmem:[%s2819_s26 + $0x1e4] sm:$0xf]  ;;  %v1465_v38 = vor.u32 %v1849_v28, %v1462_v29  ;;  %v1654_v41 = vld [vmem:[%s2819_s26 + $0x2e8] sm:$0xf0]  ;;  %v1518_v53 = vld [vmem:[%s2819_s26 + $0x1d8] sm:$0xf0] }
  0x3d   :  { %776 = vmatpush.bf16.msra.mxu2 %v1385_v30  ;;  %v2488_v30 = vpack.c.bf16 %v61_v15, %v61_v15  ;;  %v1897_v40 = vld [vmem:[%s2819_s26 + $0x2e4] sm:$0xf]  ;;  %v1895_v54 = vld [vmem:[%s2819_s26 + $0x2d4] sm:$0xf]  ;;  %v1646_v55 = vld [vmem:[%s2819_s26 + $0x2d8] sm:$0xf0] }
  0x3e   :  { %764 = vmatpush.bf16.msrb.mxu3 %v1313_v35  ;;  %v1665_v35 = vor.u32 %v1899_v24, %v1662_v25  ;;  %v1657_v49 = vor.u32 %v1897_v40, %v1654_v41  ;;  %v1446_v59 = vld [vmem:[%s2819_s26 + $0x148] sm:$0xf0]  ;;  %v1877_v60 = vld [vmem:[%s2819_s26 + $0x244] sm:$0xf]  ;;  %v1843_v6 = vld [vmem:[%s2819_s26 + $0x134] sm:$0xf] }
  0x3f   :  { %738 = vmatpush.bf16.msrb.mxu1 %v1629_v42  ;;  %v1593_v42 = vor.u32 %v1881_v32, %v1590_v33  ;;  %v1574_v61 = vld [vmem:[%s2819_s26 + $0x248] sm:$0xf0]  ;;  %v1861_v0 = vld [vmem:[%s2819_s26 + $0x1c4] sm:$0xf]  ;;  %v1438_v7 = vld [vmem:[%s2819_s26 + $0x138] sm:$0xf0] }
  0x40   :  { %726 = vmatpush.bf16.msrb.mxu0 %v1557_v47  ;;  %v1582_v47 = vld [vmem:[%s2819_s26 + $0x258] sm:$0xf0]  ;;  %v1510_v1 = vld [vmem:[%s2819_s26 + $0x1c8] sm:$0xf0]  ;;  %v1893_v2 = vld [vmem:[%s2819_s26 + $0x2c4] sm:$0xf]  ;;  %v1577_v5 = vor.u32 %v1877_v60, %v1574_v61  ;;  %v1441_v13 = vor.u32 %v1843_v6, %v1438_v7 }
  0x41   :  { %777 = vmatpush.bf16.msra.mxu2 %v1377_v44  ;;  %v1847_v44 = vld [vmem:[%s2819_s26 + $0x154] sm:$0xf]  ;;  %v1566_v9 = vld [vmem:[%s2819_s26 + $0x238] sm:$0xf0]  ;;  %v1513_v10 = vor.u32 %v1861_v0, %v1510_v1  ;;  %v1841_v18 = vld [vmem:[%s2819_s26 + $0x124] sm:$0xf] }
  0x42   :  { %765 = vmatpush.bf16.msrb.mxu3 %v1305_v48  ;;  %v1529_v48 = vor.u32 %v1865_v36, %v1526_v39  ;;  %v1457_v52 = vor.u32 %v1847_v44, %v1454_v45  ;;  %v1502_v14 = vld [vmem:[%s2819_s26 + $0x1b8] sm:$0xf0]  ;;  %v1891_v15 = vld [vmem:[%s2819_s26 + $0x2b4] sm:$0xf]  ;;  %v1430_v19 = vld [vmem:[%s2819_s26 + $0x128] sm:$0xf0] }
  0x43   :  { %739 = vmatpush.bf16.msrb.mxu1 %v1621_v56  ;;  %v1585_v56 = vor.u32 %v1879_v46, %v1582_v47  ;;  %v1873_v20 = vld [vmem:[%s2819_s26 + $0x224] sm:$0xf]  ;;  %v1433_v25 = vor.u32 %v1841_v18, %v1430_v19  ;;  %v1622_v28 = vld [vmem:[%s2819_s26 + $0x2a8] sm:$0xf0]  ;;  %v1422_v32 = vld [vmem:[%s2819_s26 + $0x118] sm:$0xf0] }
  0x44   :  { %727 = vmatpush.bf16.msrb.mxu0 %v1549_v62  ;;  %v1521_v62 = vor.u32 %v1863_v50, %v1518_v53  ;;  %v1857_v24 = vld [vmem:[%s2819_s26 + $0x1a4] sm:$0xf]  ;;  %v1871_v33 = vld [vmem:[%s2819_s26 + $0x214] sm:$0xf]  ;;  %v1486_v40 = vld [vmem:[%s2819_s26 + $0x198] sm:$0xf0] }
  0x45   :  { %778 = vmatpush.bf16.msra.mxu2 %v1369_v57  ;;  %v1845_v57 = vld [vmem:[%s2819_s26 + $0x144] sm:$0xf]  ;;  %v1887_v41 = vld [vmem:[%s2819_s26 + $0x294] sm:$0xf]  ;;  %v1414_v46 = vld [vmem:[%s2819_s26 + $0x108] sm:$0xf0] }
  0x46   :  { %766 = vmatpush.bf16.msrb.mxu3 %v1297_v63  ;;  %v1649_v63 = vor.u32 %v1895_v54, %v1646_v55  ;;  %v1889_v27 = vld [vmem:[%s2819_s26 + $0x2a4] sm:$0xf]  ;;  %v1670_v50 = vld [vmem:[%s2819_s26 + $0x308] sm:$0xf0]  ;;  %v1910_v0 = vld [vmem:[%s2800_s3 + $0x38] sm:$0xff] }
  0x47   :  { %740 = vmatpush.bf16.msrb.mxu1 %v1613_v8  ;;  %v1875_v8 = vld [vmem:[%s2819_s26 + $0x234] sm:$0xf]  ;;  %v1625_v36 = vor.u32 %v1889_v27, %v1622_v28  ;;  %v1837_v45 = vld [vmem:[%s2819_s26 + $0x104] sm:$0xf]  ;;  %v1606_v60 = vld [vmem:[%s2819_s26 + $0x288] sm:$0xf0] }
  0x48   :  { %728 = vmatpush.bf16.msrb.mxu0 %v1541_v16  ;;  %v1630_v16 = vld [vmem:[%s2819_s26 + $0x2b8] sm:$0xf0]  ;;  %v1869_v47 = vld [vmem:[%s2819_s26 + $0x204] sm:$0xf]  ;;  %v1417_v54 = vor.u32 %v1837_v45, %v1414_v46  ;;  %v169_v6 = vld [vmem:[%s2801_s2] sm:$0x3] }
  0x49   :  { %779 = vmatpush.bf16.msra.mxu2 %v1361_v12  ;;  %v1859_v12 = vld [vmem:[%s2819_s26 + $0x1b4] sm:$0xf]  ;;  %v1633_v23 = vor.u32 %v1891_v15, %v1630_v16  ;;  %v1853_v55 = vld [vmem:[%s2819_s26 + $0x184] sm:$0xf]  ;;  %v1916_v19 = vld [vmem:[%s2800_s3 + $0x68] sm:$0xff] }
  0x4a   :  { %767 = vmatpush.bf16.msrb.mxu3 %v1289_v17  ;;  %v1569_v17 = vor.u32 %v1875_v8, %v1566_v9  ;;  %v1918_v9 = vld [vmem:[%s2800_s3 + $0x78] sm:$0xff] }
  0x4b   :  { %741 = vmatpush.bf16.msrb.mxu1 %v1605_v26  ;;  %729 = vmatmul.bf16.vlgmr.msrb.gmra.mxu0 %v2488_v30  ;;  %v1494_v26 = vld [vmem:[%s2819_s26 + $0x1a8] sm:$0xf0]  ;;  %v1914_v27 = vld [vmem:[%s2800_s3 + $0x58] sm:$0xff] }
  0x4c   :  { %786 = vmatpush.bf16.msra.mxu0 %v1473_v21  ;;  %v1558_v21 = vld [vmem:[%s2819_s26 + $0x228] sm:$0xf0] }
  0x4d   :  { %780 = vmatpush.bf16.msra.mxu2 %v1353_v31  ;;  %768 = vmatmul.bf16.vlgmr.msrb.gmra.mxu3 %v2285_v58  ;;  %v1638_v58 = vld [vmem:[%s2819_s26 + $0x2c8] sm:$0xf0]  ;;  %v1561_v29 = vor.u32 %v1873_v20, %v1558_v21  ;;  %v1839_v31 = vld [vmem:[%s2819_s26 + $0x114] sm:$0xf] }
  0x4e   :  { %812 = vmatpush.bf16.msra.mxu3 %v1601_v22  ;;  %742 = vmatmul.bf16.vlgmr.msrb.gmra.mxu1 %v2499_v37  ;;  %v1641_v11 = vor.u32 %v1893_v2, %v1638_v58  ;;  %v1505_v22 = vor.u32 %v1859_v12, %v1502_v14  ;;  %v1425_v39 = vor.u32 %v1839_v31, %v1422_v32  ;;  %v1903_v58 = vld [vmem:[%s2800_s3] sm:$0xff]  ;;  %v1913_v32 = vld [vmem:[%s2800_s3 + $0x50] sm:$0xff] }
  0x4f   :  { %799 = vmatpush.bf16.msra.mxu1 %v1537_v34  ;;  %v1550_v34 = vld [vmem:[%s2819_s26 + $0x218] sm:$0xf0] }
  0x50   :  { %787 = vmatpush.bf16.msra.mxu0 %v1465_v38  ;;  %781 = vmatmul.bf16.vlgmr.msra.gmra.mxu2 %v2307_v4  ;;  %v1449_v4 = vor.u32 %v1845_v57, %v1446_v59  ;;  %v1855_v38 = vld [vmem:[%s2819_s26 + $0x194] sm:$0xf]  ;;  %v1553_v44 = vor.u32 %v1871_v33, %v1550_v34  ;;  %v1885_v59 = vld [vmem:[%s2819_s26 + $0x284] sm:$0xf] }
  0x51   :  { %825 = vmatpush.bf16.msrb.mxu2 %v1665_v35  ;;  %v1497_v35 = vor.u32 %v1857_v24, %v1494_v26 }
  0x52   :  { %813 = vmatpush.bf16.msra.mxu3 %v1593_v42  ;;  %v1614_v42 = vld [vmem:[%s2819_s26 + $0x298] sm:$0xf0] }
  0x53   :  { %800 = vmatpush.bf16.msra.mxu1 %v1529_v48  ;;  %v1542_v48 = vld [vmem:[%s2819_s26 + $0x208] sm:$0xf0]  ;;  %v1617_v53 = vor.u32 %v1887_v41, %v1614_v42  ;;  %v172_v42 = vperm.slane %v169_v6, 1 }
  0x54   :  { %788 = vmatpush.bf16.msra.mxu0 %v1457_v52  ;;  %v1489_v52 = vor.u32 %v1855_v38, %v1486_v40  ;;  %v1545_v57 = vor.u32 %v1869_v47, %v1542_v48  ;;  %v1912_v38 = vld [vmem:[%s2800_s3 + $0x48] sm:$0xff] }
  0x55   :  { %826 = vmatpush.bf16.msrb.mxu2 %v1657_v49  ;;  %v1901_v49 = vld [vmem:[%s2819_s26 + $0x304] sm:$0xf] }
  0x56   :  { %814 = vmatpush.bf16.msra.mxu3 %v1585_v56  ;;  %v1478_v56 = vld [vmem:[%s2819_s26 + $0x188] sm:$0xf0]  ;;  %v1673_v61 = vor.u32 %v1901_v49, %v1670_v50 }
  0x57   :  { %801 = vmatpush.bf16.msra.mxu1 %v1521_v62  ;;  %v1481_v62 = vor.u32 %v1853_v55, %v1478_v56 }
  0x58   :  { %789 = vmatpush.bf16.msra.mxu0 %v1449_v4  ;;  %v1909_v4 = vld [vmem:[%s2800_s3 + $0x30] sm:$0xff] }
  0x59   :  { %827 = vmatpush.bf16.msrb.mxu2 %v1649_v63  ;;  %v1609_v63 = vor.u32 %v1885_v59, %v1606_v60 }
  0x5a   :  { %815 = vmatpush.bf16.msra.mxu3 %v1577_v5 }
  0x5b   :  { %802 = vmatpush.bf16.msra.mxu1 %v1513_v10 }
  0x5c   :  { %790 = vmatpush.bf16.msra.mxu0 %v1441_v13  ;;  %v1917_v13 = vld [vmem:[%s2800_s3 + $0x70] sm:$0xff] }
  0x5d   :  { %828 = vmatpush.bf16.msrb.mxu2 %v1641_v11  ;;  %v171_v11 = vperm.slane %v169_v6, 0  ;;  %v1930_v6 = vld [vmem:[%s2804_s7 + $0x18] sm:$0xff] }
  0x5e   :  { %816 = vmatpush.bf16.msra.mxu3 %v1569_v17 }
  0x5f   :  { %803 = vmatpush.bf16.msra.mxu1 %v1505_v22  ;;  %v1915_v22 = vld [vmem:[%s2800_s3 + $0x60] sm:$0xff] }
  0x60   :  { %791 = vmatpush.bf16.msra.mxu0 %v1433_v25 }
  0x61   :  { %829 = vmatpush.bf16.msrb.mxu2 %v1633_v23 }
  0x62   :  { %817 = vmatpush.bf16.msra.mxu3 %v1561_v29 }
  0x63   :  { %804 = vmatpush.bf16.msra.mxu1 %v1497_v35 }
  0x64   :  { %792 = vmatpush.bf16.msra.mxu0 %v1425_v39  ;;  %v1911_v39 = vld [vmem:[%s2800_s3 + $0x40] sm:$0xff] }
  0x65   :  { %830 = vmatpush.bf16.msrb.mxu2 %v1625_v36 }
  0x66   :  { %818 = vmatpush.bf16.msra.mxu3 %v1553_v44 }
  0x67   :  { %805 = vmatpush.bf16.msra.mxu1 %v1489_v52 }
  0x68   :  { %793 = vmatpush.bf16.msra.mxu0 %v1417_v54 }
  0x69   :  { %831 = vmatpush.bf16.msrb.mxu2 %v1617_v53 }
  0x6a   :  { %819 = vmatpush.bf16.msra.mxu3 %v1545_v57 }
  0x6b   :  { %806 = vmatpush.bf16.msra.mxu1 %v1481_v62  ;;  %794 = vmatmul.bf16.vlgmr.msra.gmra.mxu0 %v2271_v51  ;;  %v1908_v51 = vld [vmem:[%s2800_s3 + $0x28] sm:$0xff] }
  0x6c   :  { %845 = vmatpush.bf16.msrb.mxu0 %v1673_v61 }
  0x6d   :  { %820 = vmatmul.bf16.vlgmr.msra.gmra.mxu3 %v2488_v30  ;;  %832 = vmatpush.bf16.msrb.mxu2 %v1609_v63  ;;  %v1905_v30 = vld [vmem:[%s2800_s3 + $0x10] sm:$0xff] }
  0x6e   :  { %807 = vmatmul.bf16.vlgmr.msra.gmra.mxu1 %v2305_v3  ;;  %v1907_v3 = vld [vmem:[%s2800_s3 + $0x20] sm:$0xff]  ;;  %1000 = vmatpush.bf16.msrb.mxu3 %v1918_v9 }
  0x6f   :  { %987 = vmatpush.bf16.msrb.mxu1 %v1910_v0  ;;  %v1934_v9 = vld [vmem:[%s2799_s4] ss:$0 sm:$0xff] }
  0x70   :  { %833 = vmatmul.bf16.vlgmr.msrb.gmra.mxu2 %v2499_v37  ;;  %v1904_v37 = vld [vmem:[%s2800_s3 + $0x8] sm:$0xff] }
  0x71   :  { %1142 = vmatpush.bf16.msra.mxu2 %v1930_v6 }
  0x72   :  { %1001 = vmatpush.bf16.msrb.mxu3 %v1917_v13 }
  0x73   :  { %988 = vmatpush.bf16.msrb.mxu1 %v1909_v4  ;;  %v1926_v4 = vld [vmem:[%s2803_s5 + $0x38] sm:$0xff] }
  0x74   :  { %1083 = vmatpush.bf16.msra.mxu0 %v1926_v4 }
  0x76   :  { %1002 = vmatpush.bf16.msrb.mxu3 %v1916_v19  ;;  %v1935_v19 = vld [vmem:[%s2802_s6] ss:$0 sm:$0xff] }
  0x77   :  { %989 = vmatpush.bf16.msrb.mxu1 %v1908_v51  ;;  %v1925_v51 = vld [vmem:[%s2803_s5 + $0x30] sm:$0xff] }
  0x78   :  { %1084 = vmatpush.bf16.msra.mxu0 %v1925_v51 }
  0x7a   :  { %1003 = vmatpush.bf16.msrb.mxu3 %v1915_v22 }
  0x7b   :  { %1675 = vmatmul.msk.bf16.vlgmr.msrb.gmra.mxu0 %vm665_vm0, %v2388_v43  ;;  %990 = vmatpush.bf16.msrb.mxu1 %v1907_v3  ;;  %v1906_v43 = vld [vmem:[%s2800_s3 + $0x18] sm:$0xff]  ;;  %v1924_v3 = vld [vmem:[%s2803_s5 + $0x28] sm:$0xff] }
  0x7c   :  { %1085 = vmatpush.bf16.msra.mxu0 %v1924_v3 }
  0x7e   :  { %1004 = vmatpush.bf16.msrb.mxu3 %v1914_v27 }
  0x7f   :  { %991 = vmatpush.bf16.msrb.mxu1 %v1906_v43  ;;  %v1923_v43 = vld [vmem:[%s2803_s5 + $0x20] sm:$0xff] }
  0x80   :  { %1086 = vmatpush.bf16.msra.mxu0 %v1923_v43 }
  0x82   :  { %1005 = vmatpush.bf16.msrb.mxu3 %v1913_v32 }
  0x83   :  { %992 = vmatpush.bf16.msrb.mxu1 %v1905_v30  ;;  %v1922_v30 = vld [vmem:[%s2803_s5 + $0x18] sm:$0xff] }
  0x84   :  { %1087 = vmatpush.bf16.msra.mxu0 %v1922_v30 }
  0x86   :  { %1006 = vmatpush.bf16.msrb.mxu3 %v1912_v38 }
  0x87   :  { %993 = vmatpush.bf16.msrb.mxu1 %v1904_v37  ;;  %v1921_v37 = vld [vmem:[%s2803_s5 + $0x10] sm:$0xff] }
  0x88   :  { %1088 = vmatpush.bf16.msra.mxu0 %v1921_v37 }
  0x8a   :  { %1007 = vmatpush.bf16.msrb.mxu3 %v1911_v39 }
  0x8b   :  { %994 = vmatpush.bf16.msrb.mxu1 %v1903_v58  ;;  %v1920_v58 = vld [vmem:[%s2803_s5 + $0x8] sm:$0xff] }
  0x8c   :  { %1089 = vmatpush.bf16.msra.mxu0 %v1920_v58 }
  0xa8   :  { %v678_v1 = vpop.f32.mrf.mxu0 }
  0xa9   :  { %v679_v14 = vadd.f32 %v678_v1, %v171_v11 }
  0xab   :  { %v691_v2 = vpop.f32.mrf.mxu1 }
  0xac   :  { %v692_v16 = vadd.f32 %v691_v2, %v679_v14 }
  0xaf   :  { %v704_v5 = vpop.f32.mrf.mxu2 }
  0xb0   :  { %v717_v7 = vpop.f32.mrf.mxu3  ;;  %v680_v8 = vpop.f32.mrf.mxu0  ;;  %v705_v18 = vadd.f32 %v704_v5, %v692_v16  ;;  %v1919_v5 = vld [vmem:[%s2803_s5] sm:$0xff] }
  0xb1   :  { %1090 = vmatpush.bf16.msra.mxu0 %v1919_v5  ;;  %v1928_v8 = vld [vmem:[%s2804_s7 + $0x8] sm:$0xff]  ;;  %v1927_v16 = vld [vmem:[%s2804_s7] sm:$0xff] }
  0xb2   :  { %v718_v20 = vadd.f32 %v717_v7, %v705_v18  ;;  %v1929_v7 = vld [vmem:[%s2804_s7 + $0x10] sm:$0xff]  ;;  %v1931_v18 = vld [vmem:[%s2806_s9] sm:$0xff] }
  0xb3   :  { %v693_v10 = vpop.f32.mrf.mxu1  ;;  %1143 = vmatpush.bf16.msra.mxu2 %v1929_v7 }
  0xb7   :  { %v706_v12 = vpop.f32.mrf.mxu2  ;;  %1144 = vmatpush.bf16.msra.mxu2 %v1928_v8 }
  0xb8   :  { %v719_v15 = vpop.f32.mrf.mxu3 }
  0xbb   :  { %1145 = vmatpush.bf16.msra.mxu2 %v1927_v16 }
  0xbf   :  { %v756_v17 = vpop.f32.mrf.mxu2 }
  0xc7   :  { %v758_v24 = vpop.f32.mrf.mxu2 }
  0xc8   :  { %v730_v21 = vpop.f32.mrf.mxu0 }
  0xc9   :  { %v731_v23 = vadd.f32 %v730_v21, %v718_v20 }
  0xcb   :  { %v743_v25 = vpop.f32.mrf.mxu1 }
  0xcc   :  { %v744_v26 = vadd.f32 %v743_v25, %v731_v23  ;;  %v1933_v25 = vld [vmem:[%s2808_s11] sm:$0xff] }
  0xcd   :  { %1214 = vmatpush.bf16.msrb.mxu2 %v1933_v25 }
  0xce   :  { %v757_v28 = vadd.f32 %v756_v17, %v744_v26  ;;  %v1932_v17 = vld [vmem:[%s2806_s9 + $0x8] sm:$0xff]  ;;  %v1936_v26 = vld [vmem:[%s2805_s8] ss:$0 sm:$0xff] }
  0xcf   :  { %1183 = vmatpush.bf16.msra.mxu1 %v1932_v17 }
  0xd0   :  { %v851_v29 = vmax.f32 %v757_v28, 0.0  ;;  %v732_v31 = vpop.f32.mrf.mxu0  ;;  %v769_v35 = vpop.f32.mrf.mxu3 }
  0xd1   :  { %v770_v44 = vadd.f32 %v769_v35, %v172_v42  ;;  %v1937_v35 = vld [vmem:[%s2807_s10] ss:$0 sm:$0xff] }
  0xd2   :  { %v853_v33 = vpack.c.bf16 %v851_v29, %v851_v29  ;;  %v1250_v42 = vld [vmem:[%s2812_s15] sm:$0x3] }
  0xd3   :  { %v782_v34 = vpop.f32.mrf.mxu2  ;;  %v745_v36 = vpop.f32.mrf.mxu1  ;;  %1184 = vmatpush.bf16.msra.mxu1 %v1931_v18 }
  0xd4   :  { %995 = vmatmul.bf16.vlgmr.msrb.gmra.mxu1 %v853_v33  ;;  %v783_v46 = vadd.f32 %v782_v34, %v770_v44  ;;  %v1222_v33 = vld [vmem:[%s2810_s13] sm:$0xf]  ;;  %v1261_v44 = vsel %vm1259_vm4, %v1250_v42, 0 }
  0xd5   :  { %v1233_v34 = vsel %vm1231_vm3, %v1222_v33, 0  ;;  %1270 = vmatpush.bf16.msrb.mxu0 %v1261_v44 }
  0xd6   :  { %1242 = vmatpush.bf16.msra.mxu3 %v1233_v34 }
  0xd8   :  { %v771_v41 = vpop.f32.mrf.mxu3 }
  0xdb   :  { %v784_v40 = vpop.f32.mrf.mxu2 }
  0xe8   :  { %v795_v45 = vpop.f32.mrf.mxu0 }
  0xe9   :  { %v796_v48 = vadd.f32 %v795_v45, %v783_v46  ;;  %v1938_v45 = vld [vmem:[%s2809_s12] ss:$0 sm:$0xff] }
  0xeb   :  { %v808_v47 = vpop.f32.mrf.mxu1 }
  0xec   :  { %v809_v52 = vadd.f32 %v808_v47, %v796_v48 }
  0xf0   :  { %v821_v49 = vpop.f32.mrf.mxu3  ;;  %v797_v50 = vpop.f32.mrf.mxu0 }
  0xf1   :  { %v822_v54 = vadd.f32 %v821_v49, %v809_v52  ;;  %v1939_v52 = vld [vmem:[%s2811_s14] ss:$0 sm:$0xff] }
  0xf3   :  { %v834_v53 = vpop.f32.mrf.mxu2  ;;  %v810_v55 = vpop.f32.mrf.mxu1 }
  0xf4   :  { %v835_v56 = vadd.f32 %v834_v53, %v822_v54 }
  0xf8   :  { %v823_v57 = vpop.f32.mrf.mxu3  ;;  %v847_v59 = vpop.f32.mrf.mxu0 }
  0xf9   :  { %v848_v60 = vadd.f32 %v847_v59, %v835_v56  ;;  %v1940_v59 = vld [vmem:[%s2813_s16] ss:$0 sm:$0xff] }
  0xfb   :  { %v836_v61 = vpop.f32.mrf.mxu2  ;;  %v852_v62 = vmax.f32 %v848_v60, 0.0 }
  0xfd   :  { %v854_v63 = vpack.c.bf16 %v852_v62, %v852_v62 }
  0xff   :  { %1008 = vmatmul.bf16.vlgmr.msrb.gmra.mxu3 %v854_v63 }
 0x100   :  { %v849_v0 = vpop.f32.mrf.mxu0 }
 0x151   :  { %v996_v1 = vpop.f32.mrf.mxu1 }
 0x152   :  { %v997_v10 = vadd.f32 %v1934_v9, %v996_v1 }
 0x159   :  { %v998_v2 = vpop.f32.mrf.mxu1 }
 0x182   :  { %v1009_v11 = vpop.f32.mrf.mxu3 }
 0x183   :  { %v1010_v12 = vadd.f32 %v1009_v11, %v997_v10 }
 0x185   :  { %v1013_v13 = vmax.f32 %v1010_v12, 0.0 }
 0x187   :  { %v1014_v14 = vpack.c.bf16 %v1013_v13, %v1013_v13 }
 0x189   :  { %1091 = vmatmul.bf16.vlgmr.msra.gmra.mxu0 %v1014_v14 }
 0x18a   :  { %v1011_v15 = vpop.f32.mrf.mxu3 }
 0x206   :  { %v1092_v20 = vpop.f32.mrf.mxu0 }
 0x207   :  { %v1093_v21 = vadd.f32 %v1935_v19, %v1092_v20 }
 0x209   :  { %v1096_v22 = vmax.f32 %v1093_v21, 0.0 }
 0x20b   :  { %v1097_v23 = vpack.c.bf16 %v1096_v22, %v1096_v22 }
 0x20d   :  { %1788 = vmatmul.msk.bf16.vlgmr.msra.gmra.mxu2 %vm1134_vm1, %v1097_v23 }
 0x20e   :  { %v1094_v24 = vpop.f32.mrf.mxu0 }
 0x290   :  { %v1147_v27 = vpop.f32.mrf.mxu2 }
 0x291   :  { %v1148_v28 = vadd.f32 %v1936_v26, %v1147_v27 }
 0x293   :  { %v1151_v29 = vmax.f32 %v1148_v28, 0.0 }
 0x295   :  { %v1152_v31 = vpack.c.bf16 %v1151_v29, %v1151_v29 }
 0x297   :  { %1797 = vmatmul.msk.bf16.vlgmr.msra.gmra.mxu1 %vm1173_vm2, %v1152_v31 }
 0x298   :  { %v1149_v32 = vpop.f32.mrf.mxu2 }
 0x314   :  { %v1186_v36 = vpop.f32.mrf.mxu1 }
 0x315   :  { %v1187_v38 = vadd.f32 %v1937_v35, %v1186_v36 }
 0x317   :  { %v1190_v39 = vmax.f32 %v1187_v38, 0.0 }
 0x319   :  { %v1191_v40 = vpack.c.bf16 %v1190_v39, %v1190_v39 }
 0x31b   :  { %1802 = vmatmul.msk.bf16.vlgmr.msrb.gmra.mxu2 %vm665_vm0, %v1191_v40 }
 0x31c   :  { %v1188_v41 = vpop.f32.mrf.mxu1 }
 0x39e   :  { %v1216_v46 = vpop.f32.mrf.mxu2 }
 0x39f   :  { %v1217_v47 = vadd.f32 %v1938_v45, %v1216_v46 }
 0x3a1   :  { %v1220_v48 = vmax.f32 %v1217_v47, 0.0 }
 0x3a3   :  { %v1221_v49 = vpack.c.bf16 %v1220_v48, %v1220_v48 }
 0x3a5   :  { %1803 = vmatmul.msk.bf16.vlgmr.msra.gmra.mxu3 %vm1227_vm5, %v1221_v49 }
 0x3a6   :  { %v1218_v50 = vpop.f32.mrf.mxu2 }
 0x428   :  { %v1244_v53 = vpop.f32.mrf.mxu3 }
 0x429   :  { %v1245_v54 = vadd.f32 %v1939_v52, %v1244_v53 }
 0x42b   :  { %v1248_v55 = vmax.f32 %v1245_v54, 0.0 }
 0x42d   :  { %v1249_v56 = vpack.c.bf16 %v1248_v55, %v1248_v55 }
 0x42f   :  { %1804 = vmatmul.msk.bf16.vlgmr.msrb.gmra.mxu0 %vm1255_vm6, %v1249_v56 }
 0x430   :  { %v1246_v57 = vpop.f32.mrf.mxu3 }
 0x4ac   :  { %v1272_v60 = vpop.f32.mrf.mxu0 }
 0x4ad   :  { %v1273_v61 = vadd.f32 %v1940_v59, %v1272_v60 }
 0x4af   :  { %v1276_v62 = vmax.f32 %v1273_v61, 0.0 }
 0x4b1   :  { %1277 = vst [vmem:[%s2814_s17] sm:$0xff] %v1276_v62 }
 0x4b4   :  { %v1274_v63 = vpop.f32.mrf.mxu0 }

</bundles_post_ra>
